<compile_context>
chip_gen: v5e
topology: v5e:2x2
jax: 0.10.0
libtpu: 0.0.40
codegen_flags: <defaults>
</compile_context>

<pallas_src>
import jax
import jax.numpy as jnp
from jax.experimental import pallas as pl
from jax.experimental.pallas import tpu as pltpu


def fc3_kernel(x_ref, w1_ref, b1_ref, w2_ref, b2_ref, w3_ref, b3_ref, o_ref):
    # In-kernel bf16 cast (VPU, hidden under DMA/MXU) -- must happen BEFORE the
    # first dot so the MXU sees matched bf16 x bf16 operands.
    x = x_ref[...].astype(w1_ref.dtype)
    # Layer 1: Linear(in_dim, 256) + ReLU   (bf16 matmul, f32 accumulate/ReLU)
    h1 = jnp.dot(x, w1_ref[...], preferred_element_type=jnp.float32)
    h1 = jnp.maximum(h1 + b1_ref[...], 0.0)
    # Layer 2: Linear(256, 128) + ReLU
    h2 = jnp.dot(h1.astype(w2_ref.dtype), w2_ref[...],
                 preferred_element_type=jnp.float32)
    h2 = jnp.maximum(h2 + b2_ref[...], 0.0)
    # Layer 3: Linear(128, num_classes_padded)  (logits, no activation)
    out = jnp.dot(h2.astype(w3_ref.dtype), w3_ref[...],
                  preferred_element_type=jnp.float32)
    o_ref[...] = (out + b3_ref[...]).astype(o_ref.dtype)


def _resident_spec(shape):
    """Constant-index-map spec: fetched once, kept VMEM-resident.

    Single-buffered (the block never changes), with a fallback for JAX
    versions whose BlockSpec does not accept pipeline_mode.
    """
    index_map = lambda i: (0, 0)
    buffered = getattr(pl, "Buffered", None)
    if buffered is not None:
        try:
            return pl.BlockSpec(shape, index_map, pipeline_mode=buffered(1))
        except TypeError:
            pass
    return pl.BlockSpec(shape, index_map)


def _pick_tile(batch, tb):
    """Row-tile size: full batch when tiny, otherwise a multiple of 8 capped
    at tb and sized so the grid has >= 2 steps (keeps both TensorCores busy
    on v7x; harmless on v5e/v6e)."""
    if batch <= 16:
        return batch                      # block == full array dim is always legal
    half = 8 * pl.cdiv(pl.cdiv(batch, 2), 8)
    return max(8, min(tb, half))


def fc3_forward(x, w1, b1, w2, b2, w3, b3, *, tb=1024,
                matmul_dtype=jnp.bfloat16):
    """x: [B, in_dim] float32. Weights [in, out]; biases [1, out]. Returns f32 logits."""
    B, in_dim = x.shape
    num_classes = w3.shape[1]

    # Lane-dense output width (>=128, multiple of 128) -> unmasked stores.
    n_pad = 128 * pl.cdiv(max(num_classes, 128), 128)
    if n_pad != num_classes:
        w3 = jnp.pad(w3, ((0, 0), (0, n_pad - num_classes)))
        b3 = jnp.pad(b3, ((0, 0), (0, n_pad - num_classes)))

    # bf16 weights for the MXU; biases stay f32 (VPU math stays f32).
    w1c = w1.astype(matmul_dtype)
    w2c = w2.astype(matmul_dtype)
    w3c = w3.astype(matmul_dtype)

    tb_eff = _pick_tile(B, tb)
    grid = (pl.cdiv(B, tb_eff),)          # ragged last block: Pallas clips writes

    out = pl.pallas_call(
        fc3_kernel,
        out_shape=jax.ShapeDtypeStruct((B, n_pad), jnp.float32),
        grid=grid,
        in_specs=[
            pl.BlockSpec((tb_eff, in_dim), lambda i: (i, 0)),   # x: f32, batch-tiled
            _resident_spec(w1c.shape), _resident_spec(b1.shape),
            _resident_spec(w2c.shape), _resident_spec(b2.shape),
            _resident_spec(w3c.shape), _resident_spec(b3.shape),
        ],
        out_specs=pl.BlockSpec((tb_eff, n_pad), lambda i: (i, 0)),
        compiler_params=pltpu.CompilerParams(
            dimension_semantics=("parallel",),
            vmem_limit_bytes=32 * 1024 * 1024),
    )(x, w1c, b1, w2c, b2, w3c, b3)

    return out[:, :num_classes]


def init_params(key, in_dim, num_classes):
    """Deterministic synthetic params (PyTorch-Linear-style uniform init)."""
    ks = jax.random.split(key, 6)

    def linear(kw, kb, fan_in, fan_out):
        bound = 1.0 / jnp.sqrt(fan_in)
        # Stored as [in, out] so the kernel computes x @ W + b.
        w = jax.random.uniform(kw, (fan_in, fan_out), jnp.float32, -bound, bound)
        b = jax.random.uniform(kb, (1, fan_out), jnp.float32, -bound, bound)
        return w, b

    w1, b1 = linear(ks[0], ks[1], in_dim, 256)
    w2, b2 = linear(ks[2], ks[3], 256, 128)
    w3, b3 = linear(ks[4], ks[5], 128, num_classes)
    return w1, b1, w2, b2, w3, b3


if __name__ == "__main__":
    key = jax.random.PRNGKey(0)
    k_x, k_p = jax.random.split(key)

    batch = 300        # deliberately NOT a multiple of the tile -> ragged last block
    in_dim = 256       # flattened feature dim (lane-aligned)
    num_classes = 16   # small synthetic class count (padded to 128 in-kernel)

    x = jax.random.normal(k_x, (batch, in_dim), jnp.float32)
    w1, b1, w2, b2, w3, b3 = init_params(k_p, in_dim, num_classes)

    out = fc3_forward(x, w1, b1, w2, b2, w3, b3)
    out = jax.block_until_ready(out)

    # Pure-JAX reference with the same bf16-operand / f32-accumulation recipe.
    bf = jnp.bfloat16
    h1 = jnp.maximum(
        jnp.dot(x.astype(bf), w1.astype(bf),
                preferred_element_type=jnp.float32) + b1, 0.0)
    h2 = jnp.maximum(
        jnp.dot(h1.astype(bf), w2.astype(bf),
                preferred_element_type=jnp.float32) + b2, 0.0)
    ref = jnp.dot(h2.astype(bf), w3.astype(bf),
                  preferred_element_type=jnp.float32) + b3

    assert out.shape == (batch, num_classes)
    assert jnp.allclose(out, ref, atol=1e-3, rtol=1e-3), \
        float(jnp.max(jnp.abs(out - ref)))

    print("KERNEL_OK")
</pallas_src>

<mosaic_0001>
module attributes {stable_mosaic.version = 11 : i64} {
  func.func @fc3_kernel(%arg0: i32, %arg1: memref<152x256xf32, #tpu.memory_space<vmem>>, %arg2: memref<256x256xbf16, #tpu.memory_space<vmem>>, %arg3: memref<1x256xf32, #tpu.memory_space<vmem>>, %arg4: memref<256x128xbf16, #tpu.memory_space<vmem>>, %arg5: memref<1x128xf32, #tpu.memory_space<vmem>>, %arg6: memref<128x128xbf16, #tpu.memory_space<vmem>>, %arg7: memref<1x128xf32, #tpu.memory_space<vmem>>, %arg8: memref<152x128xf32, #tpu.memory_space<vmem>>) attributes {dimension_semantics = [#tpu.dimension_semantics<parallel>], iteration_bounds = array<i64: 2>, scalar_prefetch = 0 : i64, scratch_operands = 0 : i64, tpu.core_type = #tpu.core_type<tc>, window_params = [{transform_indices = @transform_0, window_bounds = array<i64: 152, 256>}, {pipeline_mode = #tpu.pipeline_mode<synchronous>, transform_indices = @transform_1, window_bounds = array<i64: 256, 256>}, {pipeline_mode = #tpu.pipeline_mode<synchronous>, transform_indices = @transform_2, window_bounds = array<i64: 1, 256>}, {pipeline_mode = #tpu.pipeline_mode<synchronous>, transform_indices = @transform_3, window_bounds = array<i64: 256, 128>}, {pipeline_mode = #tpu.pipeline_mode<synchronous>, transform_indices = @transform_4, window_bounds = array<i64: 1, 128>}, {pipeline_mode = #tpu.pipeline_mode<synchronous>, transform_indices = @transform_5, window_bounds = array<i64: 128, 128>}, {pipeline_mode = #tpu.pipeline_mode<synchronous>, transform_indices = @transform_6, window_bounds = array<i64: 1, 128>}, {transform_indices = @transform_7, window_bounds = array<i64: 152, 128>}]} {
    %c0 = arith.constant 0 : index
    %c0_0 = arith.constant 0 : index
    %0 = vector.load %arg1[%c0, %c0_0] : memref<152x256xf32, #tpu.memory_space<vmem>>, vector<152x256xf32>
    %1 = arith.truncf %0 : vector<152x256xf32> to vector<152x256xbf16>
    %c0_1 = arith.constant 0 : index
    %c0_2 = arith.constant 0 : index
    %2 = vector.load %arg2[%c0_1, %c0_2] : memref<256x256xbf16, #tpu.memory_space<vmem>>, vector<256x256xbf16>
    %cst = arith.constant dense<0.000000e+00> : vector<152x256xf32>
    %3 = tpu.matmul %1, %2, %cst {dimension_numbers = #tpu.dot_dimension_numbers<[1], [0], [0], [1], [0, 0, 1, 1], [], []>} : vector<152x256xbf16>, vector<256x256xbf16>, vector<152x256xf32> -> vector<152x256xf32>
    %c0_3 = arith.constant 0 : index
    %c0_4 = arith.constant 0 : index
    %4 = vector.load %arg3[%c0_3, %c0_4] : memref<1x256xf32, #tpu.memory_space<vmem>>, vector<1x256xf32>
    %5 = vector.broadcast %4 : vector<1x256xf32> to vector<152x256xf32>
    %6 = arith.addf %3, %5 : vector<152x256xf32>
    %cst_5 = arith.constant 0.000000e+00 : f32
    %7 = vector.broadcast %cst_5 : f32 to vector<152x256xf32>
    %8 = arith.maximumf %6, %7 : vector<152x256xf32>
    %9 = arith.truncf %8 : vector<152x256xf32> to vector<152x256xbf16>
    %c0_6 = arith.constant 0 : index
    %c0_7 = arith.constant 0 : index
    %10 = vector.load %arg4[%c0_6, %c0_7] : memref<256x128xbf16, #tpu.memory_space<vmem>>, vector<256x128xbf16>
    %cst_8 = arith.constant dense<0.000000e+00> : vector<152x128xf32>
    %11 = tpu.matmul %9, %10, %cst_8 {dimension_numbers = #tpu.dot_dimension_numbers<[1], [0], [0], [1], [0, 0, 1, 1], [], []>} : vector<152x256xbf16>, vector<256x128xbf16>, vector<152x128xf32> -> vector<152x128xf32>
    %c0_9 = arith.constant 0 : index
    %c0_10 = arith.constant 0 : index
    %12 = vector.load %arg5[%c0_9, %c0_10] : memref<1x128xf32, #tpu.memory_space<vmem>>, vector<1x128xf32>
    %13 = vector.broadcast %12 : vector<1x128xf32> to vector<152x128xf32>
    %14 = arith.addf %11, %13 : vector<152x128xf32>
    %cst_11 = arith.constant 0.000000e+00 : f32
    %15 = vector.broadcast %cst_11 : f32 to vector<152x128xf32>
    %16 = arith.maximumf %14, %15 : vector<152x128xf32>
    %17 = arith.truncf %16 : vector<152x128xf32> to vector<152x128xbf16>
    %c0_12 = arith.constant 0 : index
    %c0_13 = arith.constant 0 : index
    %18 = vector.load %arg6[%c0_12, %c0_13] : memref<128x128xbf16, #tpu.memory_space<vmem>>, vector<128x128xbf16>
    %cst_14 = arith.constant dense<0.000000e+00> : vector<152x128xf32>
    %19 = tpu.matmul %17, %18, %cst_14 {dimension_numbers = #tpu.dot_dimension_numbers<[1], [0], [0], [1], [0, 0, 1, 1], [], []>} : vector<152x128xbf16>, vector<128x128xbf16>, vector<152x128xf32> -> vector<152x128xf32>
    %c0_15 = arith.constant 0 : index
    %c0_16 = arith.constant 0 : index
    %20 = vector.load %arg7[%c0_15, %c0_16] : memref<1x128xf32, #tpu.memory_space<vmem>>, vector<1x128xf32>
    %21 = vector.broadcast %20 : vector<1x128xf32> to vector<152x128xf32>
    %22 = arith.addf %19, %21 : vector<152x128xf32>
    %c0_17 = arith.constant 0 : index
    %c0_18 = arith.constant 0 : index
    %23 = vector.load %arg8[%c0_17, %c0_18] : memref<152x128xf32, #tpu.memory_space<vmem>>, vector<152x128xf32>
    tpu.vector_store %arg8[%c0_17, %c0_18], %22 {strides = array<i32>} : memref<152x128xf32, #tpu.memory_space<vmem>>, vector<152x128xf32>,
    return
  }
  func.func @transform_0(%arg0: i32) -> (i32, i32) {
    %c0_i32 = arith.constant 0 : i32
    %c0_i32_0 = arith.constant 0 : i32
    return %arg0, %c0_i32 : i32, i32
  }
  func.func @transform_1(%arg0: i32) -> (i32, i32) {
    %c0_i32 = arith.constant 0 : i32
    %c0_i32_0 = arith.constant 0 : i32
    %c0_i32_1 = arith.constant 0 : i32
    return %c0_i32, %c0_i32_0 : i32, i32
  }
  func.func @transform_2(%arg0: i32) -> (i32, i32) {
    %c0_i32 = arith.constant 0 : i32
    %c0_i32_0 = arith.constant 0 : i32
    %c0_i32_1 = arith.constant 0 : i32
    return %c0_i32, %c0_i32_0 : i32, i32
  }
  func.func @transform_3(%arg0: i32) -> (i32, i32) {
    %c0_i32 = arith.constant 0 : i32
    %c0_i32_0 = arith.constant 0 : i32
    %c0_i32_1 = arith.constant 0 : i32
    return %c0_i32, %c0_i32_0 : i32, i32
  }
  func.func @transform_4(%arg0: i32) -> (i32, i32) {
    %c0_i32 = arith.constant 0 : i32
    %c0_i32_0 = arith.constant 0 : i32
    %c0_i32_1 = arith.constant 0 : i32
    return %c0_i32, %c0_i32_0 : i32, i32
  }
  func.func @transform_5(%arg0: i32) -> (i32, i32) {
    %c0_i32 = arith.constant 0 : i32
    %c0_i32_0 = arith.constant 0 : i32
    %c0_i32_1 = arith.constant 0 : i32
    return %c0_i32, %c0_i32_0 : i32, i32
  }
  func.func @transform_6(%arg0: i32) -> (i32, i32) {
    %c0_i32 = arith.constant 0 : i32
    %c0_i32_0 = arith.constant 0 : i32
    %c0_i32_1 = arith.constant 0 : i32
    return %c0_i32, %c0_i32_0 : i32, i32
  }
  func.func @transform_7(%arg0: i32) -> (i32, i32) {
    %c0_i32 = arith.constant 0 : i32
    %c0_i32_0 = arith.constant 0 : i32
    return %arg0, %c0_i32 : i32, i32
  }
}

</mosaic_0001>

<bundles_post_ra>
// kernel: tpu_custom_call.1
= control target key start
LH: loop header
LB: loop body
LE: loop exit
PB: predicated region body
PF: predicated region fallthrough
CT: control target
= control target key end

     0   :  { %s2675_s0 = inlined_call_operand.hbm [shape: f32[300,256], index: 0, kind: input, shape index: {}]   ;;  %s2676_s1 = inlined_call_operand.hbm [shape: bf16[256,256], index: 1, kind: input, shape index: {}]   ;;  %s2677_s2 = inlined_call_operand.hbm [shape: f32[1,256], index: 2, kind: input, shape index: {}]   ;;  %s2678_s3 = inlined_call_operand.hbm [shape: bf16[256,128], index: 3, kind: input, shape index: {}]   ;;  %s2679_s4 = inlined_call_operand.vmem [shape: f32[1,128], index: 4, kind: input, shape index: {}]   ;;  %s2680_s5 = inlined_call_operand.hbm [shape: bf16[128,128], index: 5, kind: input, shape index: {}]   ;;  %s2681_s6 = inlined_call_operand.vmem [shape: f32[1,128], index: 6, kind: input, shape index: {}]   ;;  %s2682_s7 = inlined_call_operand.hbm [shape: f32[300,128], index: 7, kind: output, shape index: {}]  }
   0x1   :  { %2683 = sst [smem:[#allocation16_spill]] %s2676_s1 }
   0x2   :  { %2684 = sst [smem:[#allocation17_spill]] %s2677_s2 }
   0x3   :  { %2685 = sst [smem:[#allocation18_spill]] %s2678_s3 }
   0x4   :  { %12 = vsyncpa [#allocation3], 0 }
   0x5   :  { %14 = vsyncpa [#allocation3 + $0x1], 0 }
   0x6   :  { %15 = vsyncpa [#allocation6], 0 }
   0x7   :  { %16 = vsyncpa [#allocation9], 0 }
   0x8   :  { %17 = vsyncpa [#allocation4], 0 }
   0x9   :  { %19 = vsyncpa [#allocation4 + $0x1], 0  ;;  %s2164_s24 = smov 0   ;;  %s2166_s25 = smov 0  }
   0xa   :  { %s2168_s26 = smov 0   ;;  %s2170_s27 = smov 0  }
   0xb LB: > { %s2185_s28 = sadd.s32 4294967295, %s2110_s27   ;;  %s1461_s29 = sadd.s32 4294967294, %s2110_s27   ;;  %s2110_s27 = sphi %s2170_s27, %s2699_s27   ;;  %s2106_s26 = sphi %s2168_s26, %s2698_s26   ;;  %s2102_s25 = sphi %s2166_s25, %s2697_s25   ;;  %s2098_s24 = sphi %s2164_s24, %s2696_s24  }
   0xc   : > { %p45_p0 = scmp.ne.s32.totalorder %s2102_s25, %s2098_s24  ;;  %p46_p1 = scmp.eq.s32.totalorder %s2185_s28, 0 }
   0xd   : > { %p195_p2 = scmp.eq.s32.totalorder %s2185_s28, 1  ;;  %p201_p3 = scmp.eq.s32.totalorder %s1461_s29, 1 }
   0xe   : > { %p2194_p4 = por %p46_p1, %p45_p0  ;;  %p1462_p5 = scmp.ge.s32.totalorder %s2110_s27, 1 }
   0xf   : > { %p2199_p6 = por %p201_p3, %p45_p0  ;;  %p208_p7 = scmp.lt.s32.totalorder %s2110_s27, 3 }
  0x10   : > { %s2688_s1 = sld [smem:[#allocation16_spill]]  ;;  %s2112_s13 = smov [#allocation5]  }
  0x11   : > { %p2207_p8 = pnand %p1462_p5, %p208_p7  ;;  %s221_s14 = sshll.u32 %s2112_s13, 4  ;;  %s222_s14 = int_to_ptr.vmem [resolvable:$true] %s221_s14 }
  0x12   : > { %s2691_s3 = sld [smem:[#allocation18_spill]]  ;;  %s2113_s19 = smov 128  }
  0x13   : > { %p1809_p9 = pneg %p2207_p8  ;;  %s2114_s20 = smov 8  }
  0x14   : > { %s2115_s21 = smov [#allocation8]   ;;  %s2116_s23 = smov 64  }
  0x15   : > { %p2215_p10 = pnand %p1809_p9, %p46_p1  ;;  %s247_s22 = sshll.u32 %s2115_s21, 4  ;;  %s248_s22 = int_to_ptr.vmem [resolvable:$true] %s247_s22 }
  0x16   : > { %s219_s11 = sshll.u32 %s2688_s1, 4  ;;  %s2117_s29 = smov 4   ;;  %s220_s11 = int_to_ptr.hbm [resolvable:$true] %s219_s11 }
  0x17   : > { %1812 = dma.hbm_to_vmem [thread:$0]  (!%p2215_p10), %s220_s11, 4096, %s222_s14, [#allocation6], %s2113_s19, %s2113_s19, %s2114_s20  }
  0x18   : > { %s245_s18 = sshll.u32 %s2691_s3, 4  ;;  %s2692_s2 = sld [smem:[#allocation17_spill]]  ;;  %s246_s18 = int_to_ptr.hbm [resolvable:$true] %s245_s18 }
  0x19   : > { %1818 = dma.hbm_to_vmem [thread:$0]  (!%p2215_p10), %s246_s18, 2048, %s248_s22, [#allocation9], %s2116_s23, %s2116_s23, %s2117_s29  }
  0x1a   : > { %s2118_s11 = smov [#allocation7]   ;;  %s262_s19 = sshll.u32 %s2680_s5, 4  ;;  %s263_s19 = int_to_ptr.hbm [resolvable:$true] %s262_s19 }
  0x1b   : > { %s236_s14 = sshll.u32 %s2118_s11, 4  ;;  %s2119_s18 = smov [#allocation10]   ;;  %s237_s14 = int_to_ptr.vmem [resolvable:$true] %s236_s14 }
  0x1c   : > { %s264_s20 = sshll.u32 %s2119_s18, 4  ;;  %s2238_s21 = sadd.s32 1, %s2110_s27   ;;  %s265_s20 = int_to_ptr.vmem [resolvable:$true] %s264_s20 }
  0x1d   : > { %1821 = dma.hbm_to_vmem [thread:$0]  (!%p2215_p10), %s263_s19, 1024, %s265_s20, [#allocation9], %s2116_s23, %s2116_s23, %s2117_s29  }
  0x1e   : > { %s234_s13 = sshll.u32 %s2692_s2, 4  ;;  %s32_s22 = sadd.s32 1, %s2106_s26  ;;  %s235_s13 = int_to_ptr.hbm [resolvable:$true] %s234_s13 }
  0x1f   : > { %1815 = dma.hbm_to_vmem [thread:$0]  (!%p2215_p10), %s235_s13, 32, %s237_s14, [#allocation6]  }
  0x20   : > { %s29_s9 = ssub.s32 %s2110_s27, %s2238_s21  ;;  %p39_p12 = scmp.ne.s32.totalorder %s2106_s26, %s2102_s25 }
  0x21   : > { %p30_p13 = scmp.eq.s32.totalorder %s29_s9, 0  ;;  %p40_p0 = scmp.eq.s32.totalorder %s2110_s27, 0 }
  0x22   : > { %p2248_p3 = por %p195_p2, %p39_p12  ;;  %p1834_p5 = scmp.lt.s32.totalorder %s2110_s27, 2 }
  0x23   : > { %s2254_s13 = scalar_select %p30_p13, %s2106_s26, %s32_s22  }
  0x24   : > { %p41_p7 = por %p40_p0, %p39_p12  ;;  %s281_s11 = sand.u32 1, %s2106_s26  }
  0x25   : > { %s1786_s15 = smul.u32 304, %s281_s11  ;;  %s282_s22 = scalar_lea.sflag [#allocation3], %s281_s11 }
  0x26   : > { %s1761_s23 = smul.u32 304, %s2110_s27  ;;  %p2258_p9 = pnand %p1834_p5, %p41_p7 }
  0x27   : > { %s285_s19 = scalar_lea.vmem [#allocation2], %s1786_s15  ;;  %s2013_s14 = scalar_lea.hbm %s2675_s0, 608 }
  0x28   : > { %s291_s17 = scalar_lea.hbm %s2675_s0, %s1761_s23  ;;  %s294_s18 = sshll.u32 %s285_s19, 4  ;;  %s295_s18 = int_to_ptr.vmem [resolvable:$true] %s294_s18 }
  0x29   : > { %s292_s20 = sshll.u32 %s291_s17, 4  ;;  %p2010_p10 = pneg %p2258_p9  ;;  %s293_s20 = int_to_ptr.hbm [resolvable:$true] %s292_s20 }
  0x2a   : > { %s2006_s9 = sshra.s32 %s293_s20, 4  ;;  %s2007_s9 = int_to_ptr.hbm [resolvable:$true] %s2006_s9 }
  0x2b   : > { %s2008_s1 = scalar_lea.hbm %s2007_s9, 304  ;;  %p2014_p0 = scmp.lt.s32.totalorder %s2007_s9, %s2675_s0 }
  0x2c   : > { %p2009_p2 = scmp.ne.s32.totalorder %s2007_s9, %s2008_s1  ;;  %p2015_p5 = scmp.lt.s32.totalorder %s2013_s14, %s2008_s1 }
  0x2e   : > { %p2011_p12 = pnand %p2010_p10, %p2009_p2  ;;  %p2016_p7 = por %p2015_p5, %p2014_p0 }
  0x30   : > { %p2012_p13 = pneg %p2011_p12 }
  0x32   : > { %p2017_p11 = pnand %p2016_p7, %p2012_p13 }
  0x34   : > { %2020 = shalt.err (!%p2017_p11)
}
  0x35   : > { %s2120_s11 = smov 256   ;;  %s2121_s15 = smov 16  }
  0x36   : > { %1825 = dma.hbm_to_vmem [thread:$0]  (!%p2258_p9), %s293_s20, 4864, %s295_s18, %s282_s22, %s2120_s11, %s2120_s11, %s2121_s15  }
  0x37   : > { %306 = sbr.rel (%p2207_p8) target bundleno = 797 (0x31d), region = 48  ;;  %s2278_s2 = sand.u32 (!%p2207_p8), 1, %s2102_s25  }
  0x38   : > { %s1787_s3 = smul.u32 (!%p2207_p8), 304, %s2278_s2  ;;  %s309_s17 = scalar_lea.sflag (!%p2207_p8), [#allocation3], %s2278_s2 }
  0x3a   : > { %s2282_s1 = scalar_lea.vmem (!%p2207_p8), [#allocation2], %s1787_s3 }
  0x3c   : > { %2081 = dma.done.wait (%p2194_p4), %s309_s17, 4864  }
  0x3d   : > { %2083 = vsyncadd (%p2194_p4), %s309_s17, 4294962432 }
  0x3e   : > { %2085 = dma.done.wait (%p46_p1), [#allocation6], 4128  }
  0x3f   : > { %2087 = vsyncadd (%p46_p1), [#allocation6], 4294963168 }
  0x40   : > { %2089 = dma.done.wait (%p46_p1), [#allocation9], 3072  }
  0x41   : > { %2091 = vsyncadd (%p46_p1), [#allocation9], 4294964224  ;;  %v1533_v0 = vld [vmem:[#allocation5 + $0x70] sm:$0xf]  ;;  %v1719_v1 = vld [vmem:[#allocation5 + $0x74] sm:$0xf0] }
  0x42   : > { %v1525_v2 = vld [vmem:[#allocation5 + $0x60] sm:$0xf]  ;;  %v1534_v3 = vor.u32 %v1719_v1, %v1533_v0  ;;  %v1717_v4 = vld [vmem:[#allocation5 + $0x64] sm:$0xf0]  ;;  %v1597_v5 = vld [vmem:[#allocation5 + $0xf0] sm:$0xf] }
  0x43   : > { %v1735_v6 = vld [vmem:[#allocation5 + $0xf4] sm:$0xf0]  ;;  %v1526_v7 = vor.u32 %v1717_v4, %v1525_v2  ;;  %v1589_v9 = vld [vmem:[#allocation5 + $0xe0] sm:$0xf]  ;;  %v1733_v10 = vld [vmem:[#allocation5 + $0xe4] sm:$0xf0] }
  0x44   : > { %622 = vmatpush.bf16.msra.mxu0 %v1534_v3  ;;  %1762 = vmatpush.bf16.msra.mxu3 %v1534_v3  ;;  %v2296_v8 = vor.u32 %v1735_v6, %v1597_v5  ;;  %v1517_v11 = vld [vmem:[#allocation5 + $0x50] sm:$0xf]  ;;  %v1715_v12 = vld [vmem:[#allocation5 + $0x54] sm:$0xf0]  ;;  %v2299_v13 = vor.u32 %v1733_v10, %v1589_v9  ;;  %v1509_v17 = vld [vmem:[#allocation5 + $0x40] sm:$0xf] }
  0x45   : > { %v1581_v14 = vld [vmem:[#allocation5 + $0xd0] sm:$0xf]  ;;  %v1731_v15 = vld [vmem:[#allocation5 + $0xd4] sm:$0xf0]  ;;  %v1518_v16 = vor.u32 %v1715_v12, %v1517_v11  ;;  %v1713_v18 = vld [vmem:[#allocation5 + $0x44] sm:$0xf0] }
  0x46   : > { %1770 = vmatpush.bf16.msra.mxu1 %v2296_v8  ;;  %v2302_v19 = vor.u32 %v1731_v15, %v1581_v14  ;;  %v1573_v20 = vld [vmem:[#allocation5 + $0xc0] sm:$0xf]  ;;  %v1729_v21 = vld [vmem:[#allocation5 + $0xc4] sm:$0xf0]  ;;  %v1510_v22 = vor.u32 %v1713_v18, %v1509_v17  ;;  %v1501_v23 = vld [vmem:[#allocation5 + $0x30] sm:$0xf] }
  0x47   : > { %v1711_v24 = vld [vmem:[#allocation5 + $0x34] sm:$0xf0]  ;;  %v2305_v25 = vor.u32 %v1729_v21, %v1573_v20  ;;  %v1565_v26 = vld [vmem:[#allocation5 + $0xb0] sm:$0xf]  ;;  %v1493_v29 = vld [vmem:[#allocation5 + $0x20] sm:$0xf] }
  0x48   : > { %623 = vmatpush.bf16.msra.mxu0 %v1526_v7  ;;  %1763 = vmatpush.bf16.msra.mxu3 %v1526_v7  ;;  %v1727_v27 = vld [vmem:[#allocation5 + $0xb4] sm:$0xf0]  ;;  %v1502_v28 = vor.u32 %v1711_v24, %v1501_v23  ;;  %v1709_v30 = vld [vmem:[#allocation5 + $0x24] sm:$0xf0]  ;;  %v1557_v32 = vld [vmem:[#allocation5 + $0xa0] sm:$0xf] }
  0x49   : > { %v2308_v31 = vor.u32 %v1727_v27, %v1565_v26  ;;  %v1725_v33 = vld [vmem:[#allocation5 + $0xa4] sm:$0xf0]  ;;  %v1494_v34 = vor.u32 %v1709_v30, %v1493_v29  ;;  %v1485_v35 = vld [vmem:[#allocation5 + $0x10] sm:$0xf]  ;;  %v1707_v36 = vld [vmem:[#allocation5 + $0x14] sm:$0xf0] }
  0x4a   : > { %1771 = vmatpush.bf16.msra.mxu1 %v2299_v13  ;;  %v2311_v37 = vor.u32 %v1725_v33, %v1557_v32  ;;  %v1549_v38 = vld [vmem:[#allocation5 + $0x90] sm:$0xf]  ;;  %v1723_v39 = vld [vmem:[#allocation5 + $0x94] sm:$0xf0]  ;;  %v1486_v40 = vor.u32 %v1707_v36, %v1485_v35  ;;  %v1477_v41 = vld [vmem:[#allocation5] sm:$0xf] }
  0x4b   : > { %v1705_v42 = vld [vmem:[#allocation5 + $0x4] sm:$0xf0]  ;;  %v1734_v43 = vld [vmem:[#allocation5 + $0xf4] sm:$0xf]  ;;  %v1599_v44 = vld [vmem:[#allocation5 + $0xf8] sm:$0xf0]  ;;  %v1550_v45 = vor.u32 %v1723_v39, %v1549_v38 }
  0x4c   : > { %624 = vmatpush.bf16.msra.mxu0 %v1518_v16  ;;  %1764 = vmatpush.bf16.msra.mxu3 %v1518_v16  ;;  %v366_v46 = vld [vmem:[%s2282_s1] sm:$0xff]  ;;  %v1721_v48 = vld [vmem:[#allocation5 + $0x84] sm:$0xf0]  ;;  %v1478_v49 = vor.u32 %v1705_v42, %v1477_v41  ;;  %v368_v50 = vld [vmem:[%s2282_s1 + $0x10] sm:$0xff]  ;;  %v1602_v53 = vor.u32 %v1734_v43, %v1599_v44  ;;  %s1788_s29 = smul.u32 152, %s2278_s2  ;;  %s1335_s15 = scalar_lea.sflag [#allocation4], %s2278_s2 }
  0x4d   : > { %v1541_v47 = vld [vmem:[#allocation5 + $0x80] sm:$0xf]  ;;  %v375_v55 = vld [vmem:[%s2282_s1 + $0x48] sm:$0xff]  ;;  %v377_v56 = vld [vmem:[%s2282_s1 + $0x58] sm:$0xff]  ;;  %v2320_v57 = vpack.c.bf16 %v368_v50, %v366_v46  ;;  %s1760_s22 = smul.u32 152, %s2185_s28  ;;  %s2056_s30 = scalar_lea.hbm %s2682_s7, 304 }
  0x4e   : > { %1772 = vmatpush.bf16.msra.mxu1 %v2302_v19  ;;  %v374_v51 = vld [vmem:[%s2282_s1 + $0x40] sm:$0xff]  ;;  %v376_v52 = vld [vmem:[%s2282_s1 + $0x50] sm:$0xff]  ;;  %v1542_v54 = vor.u32 %v1721_v48, %v1541_v47  ;;  %v1591_v60 = vld [vmem:[#allocation5 + $0xe8] sm:$0xf0]  ;;  %v2325_v61 = vpack.c.bf16 %v377_v56, %v375_v55  ;;  %s2602_s20 = scalar_lea.vmem [#allocation11], %s1788_s29 }
  0x4f   : > { %v2322_v58 = vpack.c.bf16 %v376_v52, %v374_v51  ;;  %v1732_v59 = vld [vmem:[#allocation5 + $0xe4] sm:$0xf]  ;;  %v1730_v63 = vld [vmem:[#allocation5 + $0xd4] sm:$0xf]  ;;  %v1583_v0 = vld [vmem:[#allocation5 + $0xd8] sm:$0xf0]  ;;  %s1346_s16 = scalar_lea.hbm %s2682_s7, %s1760_s22 }
  0x50   : > { %625 = vmatpush.bf16.msra.mxu0 %v1510_v22  ;;  %1765 = vmatpush.bf16.msra.mxu3 %v1510_v22  ;;  %v1594_v62 = vor.u32 %v1732_v59, %v1591_v60  ;;  %v1586_v1 = vor.u32 %v1730_v63, %v1583_v0  ;;  %v370_v2 = vld [vmem:[%s2282_s1 + $0x20] sm:$0xff]  ;;  %v372_v3 = vld [vmem:[%s2282_s1 + $0x30] sm:$0xff]  ;;  %v379_v6 = vld [vmem:[%s2282_s1 + $0x68] sm:$0xff]  ;;  %s1347_s23 = sshll.u32 %s2602_s20, 4  ;;  %s1349_s11 = sshll.u32 %s1346_s16, 4  ;;  %s1348_s23 = int_to_ptr.vmem [resolvable:$true] %s1347_s23  ;;  %s1350_s11 = int_to_ptr.hbm [resolvable:$true] %s1349_s11 }
  0x51   : > { %v378_v4 = vld [vmem:[%s2282_s1 + $0x60] sm:$0xff]  ;;  %v380_v5 = vld [vmem:[%s2282_s1 + $0x70] sm:$0xff]  ;;  %v381_v7 = vld [vmem:[%s2282_s1 + $0x78] sm:$0xff]  ;;  %s2050_s3 = sshra.s32 %s1350_s11, 4  ;;  %s2051_s3 = int_to_ptr.hbm [resolvable:$true] %s2050_s3 }
  0x52   : > { %1773 = vmatpush.bf16.msra.mxu1 %v2305_v25  ;;  %v2341_v9 = vpack.c.bf16 %v380_v5, %v378_v4  ;;  %v2344_v10 = vpack.c.bf16 %v381_v7, %v379_v6  ;;  %v1728_v11 = vld [vmem:[#allocation5 + $0xc4] sm:$0xf]  ;;  %v1575_v12 = vld [vmem:[#allocation5 + $0xc8] sm:$0xf0]  ;;  %v1726_v23 = vld [vmem:[#allocation5 + $0xb4] sm:$0xf]  ;;  %p2057_p11 = scmp.lt.s32.totalorder %s2051_s3, %s2682_s7 }
  0x53   : > { %v382_v14 = vld [vmem:[%s2282_s1 + $0x80] sm:$0xff]  ;;  %v384_v15 = vld [vmem:[%s2282_s1 + $0x90] sm:$0xff]  ;;  %v367_v16 = vld [vmem:[%s2282_s1 + $0x8] sm:$0xff]  ;;  %s2052_s28 = scalar_lea.hbm %s2051_s3, 152 }
  0x54   : > { %626 = vmatpush.bf16.msra.mxu0 %v1502_v28  ;;  %1766 = vmatpush.bf16.msra.mxu3 %v1502_v28  ;;  %v369_v17 = vld [vmem:[%s2282_s1 + $0x18] sm:$0xff]  ;;  %v383_v18 = vld [vmem:[%s2282_s1 + $0x88] sm:$0xff]  ;;  %v2356_v20 = vpack.c.bf16 %v384_v15, %v382_v14  ;;  %v386_v26 = vld [vmem:[%s2282_s1 + $0xa0] sm:$0xff]  ;;  %p2053_p1 = scmp.ne.s32.totalorder %s2051_s3, %s2052_s28  ;;  %p2058_p9 = scmp.lt.s32.totalorder %s2056_s30, %s2052_s28 }
  0x55   : > { %v2358_v21 = vpack.c.bf16 %v369_v17, %v367_v16  ;;  %v1567_v24 = vld [vmem:[#allocation5 + $0xb8] sm:$0xf0]  ;;  %v388_v27 = vld [vmem:[%s2282_s1 + $0xb0] sm:$0xff]  ;;  %v1559_v36 = vld [vmem:[#allocation5 + $0xa8] sm:$0xf0] }
  0x56   : > { %1774 = vmatpush.bf16.msra.mxu1 %v2308_v31  ;;  %v371_v28 = vld [vmem:[%s2282_s1 + $0x28] sm:$0xff]  ;;  %v373_v29 = vld [vmem:[%s2282_s1 + $0x38] sm:$0xff]  ;;  %v2371_v32 = vpack.c.bf16 %v388_v27, %v386_v26  ;;  %v1724_v35 = vld [vmem:[#allocation5 + $0xa4] sm:$0xf]  ;;  %p2054_p4 = pnand %p2053_p1, %p2248_p3  ;;  %p2059_p2 = por %p2058_p9, %p2057_p11 }
  0x57   : > { %v387_v30 = vld [vmem:[%s2282_s1 + $0xa8] sm:$0xff]  ;;  %v2373_v33 = vpack.c.bf16 %v373_v29, %v371_v28  ;;  %v1718_v38 = vld [vmem:[#allocation5 + $0x74] sm:$0xf]  ;;  %v393_v44 = vld [vmem:[%s2282_s1 + $0xd8] sm:$0xff] }
  0x58   : > { %627 = vmatpush.bf16.msra.mxu0 %v1494_v34  ;;  %1767 = vmatpush.bf16.msra.mxu3 %v1494_v34  ;;  %v1535_v39 = vld [vmem:[#allocation5 + $0x78] sm:$0xf0]  ;;  %v390_v41 = vld [vmem:[%s2282_s1 + $0xc0] sm:$0xff]  ;;  %v392_v42 = vld [vmem:[%s2282_s1 + $0xd0] sm:$0xff]  ;;  %p2055_p8 = pneg %p2054_p4 }
  0x59   : > { %v391_v43 = vld [vmem:[%s2282_s1 + $0xc8] sm:$0xff]  ;;  %v1716_v47 = vld [vmem:[#allocation5 + $0x64] sm:$0xf]  ;;  %v1722_v50 = vld [vmem:[#allocation5 + $0x94] sm:$0xf] }
  0x5a   : > { %1775 = vmatpush.bf16.msra.mxu1 %v2311_v37  ;;  %v2386_v46 = vpack.c.bf16 %v393_v44, %v391_v43  ;;  %v1527_v48 = vld [vmem:[#allocation5 + $0x68] sm:$0xf0]  ;;  %v1551_v51 = vld [vmem:[#allocation5 + $0x98] sm:$0xf0]  ;;  %v1714_v52 = vld [vmem:[#allocation5 + $0x54] sm:$0xf]  ;;  %p2060_p10 = pnand %p2059_p2, %p2055_p8 }
  0x5b   : > { %v1712_v56 = vld [vmem:[#allocation5 + $0x44] sm:$0xf]  ;;  %v1511_v59 = vld [vmem:[#allocation5 + $0x48] sm:$0xf0]  ;;  %v1503_v63 = vld [vmem:[#allocation5 + $0x38] sm:$0xf0] }
  0x5c   : > { %628 = vmatpush.bf16.msra.mxu0 %v1486_v40  ;;  %1768 = vmatpush.bf16.msra.mxu3 %v1486_v40  ;;  %v1538_v40 = vor.u32 %v1718_v38, %v1535_v39  ;;  %v1514_v60 = vor.u32 %v1712_v56, %v1511_v59  ;;  %v394_v0 = vld [vmem:[%s2282_s1 + $0xe0] sm:$0xff]  ;;  %v397_v4 = vld [vmem:[%s2282_s1 + $0xf8] sm:$0xff]  ;;  %v400_v26 = vld [vmem:[%s2282_s1 + $0x110] sm:$0xff] }
  0x5d   : > { %v1708_v7 = vld [vmem:[#allocation5 + $0x24] sm:$0xf]  ;;  %v1543_v14 = vld [vmem:[#allocation5 + $0x88] sm:$0xf0]  ;;  %v1706_v15 = vld [vmem:[#allocation5 + $0x14] sm:$0xf] }
  0x5e   : > { %1776 = vmatpush.bf16.msra.mxu1 %v1550_v45  ;;  %1778 = vmatpush.bf16.msra.mxu2 %v1538_v40  ;;  %v1487_v17 = vld [vmem:[#allocation5 + $0x18] sm:$0xf0]  ;;  %v1741_v39 = vld [vmem:[#allocation8 + $0x28] sm:$0xff]  ;;  %v1738_v43 = vld [vmem:[#allocation8 + $0x10] sm:$0xff] }
  0x5f   : > { %v399_v27 = vld [vmem:[%s2282_s1 + $0x108] sm:$0xff]  ;;  %v401_v28 = vld [vmem:[%s2282_s1 + $0x118] sm:$0xff] }
  0x60   : > { %629 = vmatpush.bf16.msra.mxu0 %v1478_v49  ;;  %1769 = vmatpush.bf16.msra.mxu3 %v1478_v49  ;;  %v1530_v49 = vor.u32 %v1716_v47, %v1527_v48  ;;  %v1750_v47 = vld [vmem:[#allocation8 + $0x70] sm:$0xff] }
  0x62   : > { %1777 = vmatpush.bf16.msra.mxu1 %v1542_v54  ;;  %1779 = vmatpush.bf16.msra.mxu2 %v1530_v49 }
  0x63   : > { %630 = vmatmul.bf16.vlgmr.msra.gmra.mxu0 %v2320_v57  ;;  %640 = vmatmul.bf16.vlgmr.msra.gmra.mxu3 %v2322_v58 }
  0x64   : > { %796 = vmatpush.bf16.msrb.mxu3 %v1602_v53  ;;  %680 = vmatpush.bf16.msrb.mxu0 %v2296_v8  ;;  %v2339_v8 = vpack.c.bf16 %v372_v3, %v370_v2  ;;  %v1554_v53 = vor.u32 %v1722_v50, %v1551_v51  ;;  %v395_v3 = vld [vmem:[%s2282_s1 + $0xe8] sm:$0xff] }
  0x65   : > { %698 = vmatmul.bf16.vlgmr.msra.gmra.mxu1 %v2325_v61  ;;  %v2396_v6 = vpack.c.bf16 %v397_v4, %v395_v3  ;;  %v1748_v4 = vld [vmem:[#allocation8 + $0x60] sm:$0xff] }
  0x68   : > { %681 = vmatpush.bf16.msrb.mxu0 %v2299_v13  ;;  %797 = vmatpush.bf16.msrb.mxu3 %v1594_v62  ;;  %v1578_v13 = vor.u32 %v1728_v11, %v1575_v12  ;;  %v1710_v62 = vld [vmem:[#allocation5 + $0x34] sm:$0xf]  ;;  %v1495_v11 = vld [vmem:[#allocation5 + $0x28] sm:$0xf0] }
  0x69   : > { %v1506_v2 = vor.u32 %v1710_v62, %v1503_v63  ;;  %v1498_v12 = vor.u32 %v1708_v7, %v1495_v11 }
  0x6c   : > { %682 = vmatpush.bf16.msrb.mxu0 %v2302_v19  ;;  %798 = vmatpush.bf16.msrb.mxu3 %v1586_v1  ;;  %v385_v19 = vld [vmem:[%s2282_s1 + $0x98] sm:$0xff]  ;;  %v396_v1 = vld [vmem:[%s2282_s1 + $0xf0] sm:$0xff] }
  0x6d   : > { %v2360_v22 = vpack.c.bf16 %v385_v19, %v383_v18  ;;  %v2394_v5 = vpack.c.bf16 %v396_v1, %v394_v0  ;;  %v1490_v18 = vor.u32 %v1706_v15, %v1487_v17  ;;  %v1704_v19 = vld [vmem:[#allocation5 + $0x4] sm:$0xf] }
  0x70   : > { %683 = vmatpush.bf16.msrb.mxu0 %v2305_v25  ;;  %799 = vmatpush.bf16.msrb.mxu3 %v1578_v13  ;;  %v1570_v25 = vor.u32 %v1726_v23, %v1567_v24  ;;  %v1720_v13 = vld [vmem:[#allocation5 + $0x84] sm:$0xf]  ;;  %v1479_v23 = vld [vmem:[#allocation5 + $0x8] sm:$0xf0] }
  0x71   : > { %v1546_v16 = vor.u32 %v1720_v13, %v1543_v14  ;;  %v1482_v24 = vor.u32 %v1704_v19, %v1479_v23 }
  0x73   : > { %635 = vmatmul.bf16.gmra.mxu0 %v2339_v8  ;;  %645 = vmatmul.bf16.gmra.mxu3 %v2341_v9 }
  0x74   : > { %684 = vmatpush.bf16.msrb.mxu0 %v2308_v31  ;;  %800 = vmatpush.bf16.msrb.mxu3 %v1570_v25  ;;  %v389_v31 = vld [vmem:[%s2282_s1 + $0xb8] sm:$0xff]  ;;  %v398_v25 = vld [vmem:[%s2282_s1 + $0x100] sm:$0xff] }
  0x75   : > { %703 = vmatmul.bf16.gmra.mxu1 %v2344_v10  ;;  %v2375_v34 = vpack.c.bf16 %v389_v31, %v387_v30  ;;  %v2404_v29 = vpack.c.bf16 %v400_v26, %v398_v25  ;;  %v2408_v30 = vpack.c.bf16 %v401_v28, %v399_v27  ;;  %v402_v31 = vld [vmem:[%s2282_s1 + $0x120] sm:$0xff] }
  0x76   : > { %v1747_v25 = vld [vmem:[#allocation8 + $0x58] sm:$0xff] }
  0x78   : > { %685 = vmatpush.bf16.msrb.mxu0 %v2311_v37  ;;  %v1562_v37 = vor.u32 %v1724_v35, %v1559_v36  ;;  %v403_v35 = vld [vmem:[%s2282_s1 + $0x128] sm:$0xff] }
  0x79   : > { %v1743_v36 = vld [vmem:[#allocation8 + $0x38] sm:$0xff]  ;;  %v2418_v38 = vpack.c.bf16 %v403_v35, %v403_v35 }
  0x7a   : > { %801 = vmatpush.bf16.msrb.mxu3 %v1562_v37  ;;  %v2414_v37 = vpack.c.bf16 %v402_v31, %v402_v31 }
  0x7c   : > { %686 = vmatpush.bf16.msrb.mxu0 %v1550_v45  ;;  %v2384_v45 = vpack.c.bf16 %v392_v42, %v390_v41  ;;  %v1739_v41 = vld [vmem:[#allocation8 + $0x18] sm:$0xff] }
  0x7e   : > { %802 = vmatpush.bf16.msrb.mxu3 %v1554_v53  ;;  %v1736_v53 = vld [vmem:[#allocation8] sm:$0xff] }
  0x80   : > { %687 = vmatpush.bf16.msrb.mxu0 %v1542_v54  ;;  %v1519_v54 = vld [vmem:[#allocation5 + $0x58] sm:$0xf0] }
  0x81   : > { %v1522_v55 = vor.u32 %v1714_v52, %v1519_v54 }
  0x82   : > { %803 = vmatpush.bf16.msrb.mxu3 %v1546_v16 }
  0x83   : > { %650 = vmatmul.bf16.gmra.mxu3 %v2356_v20  ;;  %688 = vmatmul.bf16.vlgmr.msrb.gmra.mxu0 %v2358_v21 }
  0x84   : > { %738 = vmatpush.bf16.msra.mxu0 %v1538_v40  ;;  %1780 = vmatpush.bf16.msra.mxu2 %v1522_v55  ;;  %v1740_v40 = vld [vmem:[#allocation8 + $0x20] sm:$0xff] }
  0x85   : > { %708 = vmatmul.bf16.gmra.mxu1 %v2360_v22 }
  0x88   : > { %739 = vmatpush.bf16.msra.mxu0 %v1530_v49  ;;  %1781 = vmatpush.bf16.msra.mxu2 %v1514_v60  ;;  %v1737_v49 = vld [vmem:[#allocation8 + $0x8] sm:$0xff] }
  0x8c   : > { %740 = vmatpush.bf16.msra.mxu0 %v1522_v55  ;;  %1782 = vmatpush.bf16.msra.mxu2 %v1506_v2 }
  0x90   : > { %741 = vmatpush.bf16.msra.mxu0 %v1514_v60  ;;  %1783 = vmatpush.bf16.msra.mxu2 %v1498_v12 }
  0x93   : > { %655 = vmatmul.bf16.gmra.mxu3 %v2371_v32  ;;  %693 = vmatmul.bf16.gmra.mxu0 %v2373_v33 }
  0x94   : > { %742 = vmatpush.bf16.msra.mxu0 %v1506_v2  ;;  %1784 = vmatpush.bf16.msra.mxu2 %v1490_v18 }
  0x95   : > { %713 = vmatmul.bf16.gmra.mxu1 %v2375_v34 }
  0x98   : > { %743 = vmatpush.bf16.msra.mxu0 %v1498_v12  ;;  %1785 = vmatpush.bf16.msra.mxu2 %v1482_v24 }
  0x9b   : > { %756 = vmatmul.bf16.vlgmr.msra.gmra.mxu2 %v2322_v58  ;;  %v1751_v58 = vld [vmem:[#allocation8 + $0x78] sm:$0xff] }
  0x9c   : > { %744 = vmatpush.bf16.msra.mxu0 %v1490_v18  ;;  %1102 = vmatpush.bf16.msrb.mxu1 %v1751_v58 }
  0xa0   : > { %745 = vmatpush.bf16.msra.mxu0 %v1482_v24  ;;  %1103 = vmatpush.bf16.msrb.mxu1 %v1750_v47 }
  0xa3   : > { %660 = vmatmul.bf16.gmra.mxu3 %v2384_v45  ;;  %746 = vmatmul.bf16.vlgmr.msra.gmra.mxu0 %v2320_v57  ;;  %v1742_v57 = vld [vmem:[#allocation8 + $0x30] sm:$0xff] }
  0xa4   : > { %1044 = vmatpush.bf16.msrb.mxu0 %v1743_v36 }
  0xa5   : > { %718 = vmatmul.bf16.gmra.mxu1 %v2386_v46 }
  0xa8   : > { %1045 = vmatpush.bf16.msrb.mxu0 %v1742_v57 }
  0xab   : > { %761 = vmatmul.bf16.gmra.mxu2 %v2341_v9 }
  0xac   : > { %1046 = vmatpush.bf16.msrb.mxu0 %v1741_v39 }
  0xb0   : > { %1047 = vmatpush.bf16.msrb.mxu0 %v1740_v40 }
  0xb3   : > { %665 = vmatmul.bf16.gmra.mxu3 %v2394_v5  ;;  %751 = vmatmul.bf16.gmra.mxu0 %v2339_v8  ;;  %v2423_v8 = vld [vmem:[#allocation7] sm:$0x3] }
  0xb4   : > { %1048 = vmatpush.bf16.msrb.mxu0 %v1739_v41  ;;  %v2426_v44 = vperm.slane %v2423_v8, 0 }
  0xb5   : > { %723 = vmatmul.bf16.gmra.mxu1 %v2396_v6 }
  0xb8   : > { %1049 = vmatpush.bf16.msrb.mxu0 %v1738_v43 }
  0xbb   : > { %766 = vmatmul.bf16.gmra.mxu2 %v2356_v20 }
  0xbc   : > { %1050 = vmatpush.bf16.msrb.mxu0 %v1737_v49 }
  0xc0   : > { %1051 = vmatpush.bf16.msrb.mxu0 %v1736_v53 }
  0xc3   : > { %670 = vmatmul.bf16.gmra.mxu3 %v2404_v29 }
  0xc5   : > { %728 = vmatmul.bf16.gmra.mxu1 %v2408_v30 }
  0xcb   : > { %771 = vmatmul.bf16.gmra.mxu2 %v2371_v32 }
  0xd3   : > { %675 = vmatmul.bf16.gmra.mxu3 %v2414_v37 }
  0xd5   : > { %733 = vmatmul.bf16.gmra.mxu1 %v2418_v38 }
  0xdb   : > { %776 = vmatmul.bf16.gmra.mxu2 %v2384_v45 }
  0xe0   : > { %v631_v9 = vpop.f32.mrf.mxu0 }
  0xe1   : > { %v632_v3 = vadd.f32 %v631_v9, %v2426_v44 }
  0xe2   : > { %v699_v42 = vpop.f32.mrf.mxu1 }
  0xe3   : > { %804 = vmatmul.bf16.vlgmr.msrb.gmra.mxu3 %v2358_v21  ;;  %v1749_v21 = vld [vmem:[#allocation8 + $0x68] sm:$0xff] }
  0xe4   : > { %1104 = vmatpush.bf16.msrb.mxu1 %v1749_v21 }
  0xe6   : > { %v641_v48 = vpop.f32.mrf.mxu3 }
  0xe7   : > { %v642_v50 = vadd.f32 %v641_v48, %v2426_v44 }
  0xe8   : > { %v633_v51 = vpop.f32.mrf.mxu0  ;;  %1105 = vmatpush.bf16.msrb.mxu1 %v1748_v4 }
  0xe9   : > { %v2430_v20 = vadd.f32 %v699_v42, %v642_v50  ;;  %v1746_v42 = vld [vmem:[#allocation8 + $0x50] sm:$0xff] }
  0xea   : > { %v701_v52 = vpop.f32.mrf.mxu1 }
  0xeb   : > { %781 = vmatmul.bf16.gmra.mxu2 %v2394_v5  ;;  %v862_v53 = vmax.f32 %v2430_v20, 0.0 }
  0xec   : > { %1106 = vmatpush.bf16.msrb.mxu1 %v1747_v25 }
  0xee   : > { %v643_v54 = vpop.f32.mrf.mxu3 }
  0xf0   : > { %v636_v55 = vpop.f32.mrf.mxu0  ;;  %1107 = vmatpush.bf16.msrb.mxu1 %v1746_v42 }
  0xf1   : > { %v637_v23 = vadd.f32 %v636_v55, %v2426_v44 }
  0xf2   : > { %v704_v56 = vpop.f32.mrf.mxu1 }
  0xf3   : > { %809 = vmatmul.bf16.gmra.mxu3 %v2373_v33  ;;  %v634_v33 = vadd.f32 %v633_v51, %v2426_v44 }
  0xf6   : > { %v646_v59 = vpop.f32.mrf.mxu3 }
  0xf7   : > { %v647_v60 = vadd.f32 %v646_v59, %v2426_v44 }
  0xf8   : > { %v638_v62 = vpop.f32.mrf.mxu0 }
  0xf9   : > { %v2435_v63 = vadd.f32 %v704_v56, %v647_v60  ;;  %v639_v26 = vadd.f32 %v638_v62, %v2426_v44 }
  0xfa   : > { %v706_v0 = vpop.f32.mrf.mxu1 }
  0xfb   : > { %786 = vmatmul.bf16.gmra.mxu2 %v2404_v29 }
  0xfe   : > { %v648_v1 = vpop.f32.mrf.mxu3 }
  0xff   : > { %v649_v29 = vadd.f32 %v648_v1, %v2426_v44 }
 0x100   : > { %v689_v2 = vpop.f32.mrf.mxu0 }
 0x101   : > { %v690_v7 = vadd.f32 %v689_v2, %v632_v3  ;;  %v866_v2 = vmax.f32 %v2435_v63, 0.0 }
 0x102   : > { %v709_v32 = vpop.f32.mrf.mxu1 }
 0x103   : > { %814 = vmatmul.bf16.gmra.mxu3 %v2325_v61  ;;  %v854_v14 = vmax.f32 %v690_v7, 0.0 }
 0x106   : > { %v651_v11 = vpop.f32.mrf.mxu3 }
 0x107   : > { %v652_v12 = vadd.f32 %v651_v11, %v2426_v44 }
 0x108   : > { %v691_v13 = vpop.f32.mrf.mxu0 }
 0x109   : > { %v692_v15 = vadd.f32 %v691_v13, %v634_v33  ;;  %v2442_v16 = vadd.f32 %v709_v32, %v652_v12 }
 0x10a   : > { %v711_v45 = vpop.f32.mrf.mxu1 }
 0x10b   : > { %v856_v17 = vmax.f32 %v692_v15, 0.0  ;;  %791 = vmatmul.bf16.gmra.mxu2 %v2414_v37  ;;  %v870_v63 = vmax.f32 %v2442_v16, 0.0 }
 0x10d   : > { %v892_v18 = vpack.c.bf16 %v856_v17, %v854_v14 }
 0x10e   : > { %v653_v19 = vpop.f32.mrf.mxu3 }
 0x10f   : > { %1052 = vmatmul.bf16.vlgmr.msrb.gmra.mxu0 %v892_v18  ;;  %v654_v1 = vadd.f32 %v653_v19, %v2426_v44 }
 0x110   : > { %v694_v61 = vpop.f32.mrf.mxu0 }
 0x111   : > { %v695_v27 = vadd.f32 %v694_v61, %v637_v23 }
 0x112   : > { %v714_v24 = vpop.f32.mrf.mxu1 }
 0x113   : > { %819 = vmatmul.bf16.gmra.mxu3 %v2344_v10  ;;  %v858_v36 = vmax.f32 %v695_v27, 0.0  ;;  %v644_v10 = vadd.f32 %v643_v54, %v2426_v44  ;;  %v1745_v54 = vld [vmem:[#allocation8 + $0x48] sm:$0xff] }
 0x114   : > { %1108 = vmatpush.bf16.msrb.mxu1 %v1745_v54 }
 0x115   : > { %v702_v43 = vadd.f32 %v701_v52, %v644_v10  ;;  %v707_v52 = vadd.f32 %v706_v0, %v649_v29  ;;  %v712_v0 = vadd.f32 %v711_v45, %v654_v1 }
 0x116   : > { %v656_v28 = vpop.f32.mrf.mxu3 }
 0x117   : > { %v657_v31 = vadd.f32 %v656_v28, %v2426_v44  ;;  %v864_v49 = vmax.f32 %v702_v43, 0.0  ;;  %v868_v60 = vmax.f32 %v707_v52, 0.0  ;;  %v872_v7 = vmax.f32 %v712_v0, 0.0 }
 0x118   : > { %v696_v35 = vpop.f32.mrf.mxu0 }
 0x119   : > { %v697_v57 = vadd.f32 %v696_v35, %v639_v26  ;;  %v2449_v58 = vadd.f32 %v714_v24, %v657_v31  ;;  %v896_v55 = vpack.c.bf16 %v864_v49, %v862_v53  ;;  %v898_v3 = vpack.c.bf16 %v868_v60, %v866_v2  ;;  %v1759_v31 = vld [vmem:[#allocation10 + $0x38] sm:$0xff] }
 0x11a   : > { %v716_v5 = vpop.f32.mrf.mxu1  ;;  %v900_v13 = vpack.c.bf16 %v872_v7, %v870_v63  ;;  %1257 = vmatpush.bf16.msrb.mxu2 %v1759_v31 }
 0x11b   : > { %v860_v39 = vmax.f32 %v697_v57, 0.0  ;;  %v874_v25 = vmax.f32 %v2449_v58, 0.0 }
 0x11d   : > { %v894_v40 = vpack.c.bf16 %v860_v39, %v858_v36  ;;  %v2484_v36 = vperm.slane %v2423_v8, 1 }
 0x11e   : > { %v658_v41 = vpop.f32.mrf.mxu3  ;;  %v757_v23 = vpop.f32.mrf.mxu2 }
 0x11f   : > { %1057 = vmatmul.bf16.gmra.mxu0 %v894_v40  ;;  %v659_v15 = vadd.f32 %v658_v41, %v2426_v44  ;;  %v758_v7 = vadd.f32 %v757_v23, %v2484_v36 }
 0x120   : > { %v747_v16 = vpop.f32.mrf.mxu0 }
 0x121   : > { %v748_v58 = vadd.f32 %v747_v16, %v2484_v36 }
 0x122   : > { %v719_v9 = vpop.f32.mrf.mxu1 }
 0x123   : > { %824 = vmatmul.bf16.gmra.mxu3 %v2360_v22 }
 0x126   : > { %v661_v47 = vpop.f32.mrf.mxu3  ;;  %v759_v35 = vpop.f32.mrf.mxu2 }
 0x127   : > { %v662_v48 = vadd.f32 %v661_v47, %v2426_v44 }
 0x128   : > { %v749_v57 = vpop.f32.mrf.mxu0 }
 0x129   : > { %v2455_v50 = vadd.f32 %v719_v9, %v662_v48  ;;  %v750_v10 = vadd.f32 %v749_v57, %v2484_v36 }
 0x12a   : > { %v721_v51 = vpop.f32.mrf.mxu1 }
 0x12b   : > { %v878_v41 = vmax.f32 %v2455_v50, 0.0 }
 0x12e   : > { %v663_v56 = vpop.f32.mrf.mxu3  ;;  %v762_v40 = vpop.f32.mrf.mxu2 }
 0x12f   : > { %1062 = vmatmul.bf16.gmra.mxu0 %v896_v55  ;;  %v664_v28 = vadd.f32 %v663_v56, %v2426_v44 }
 0x132   : > { %v724_v22 = vpop.f32.mrf.mxu1 }
 0x133   : > { %829 = vmatmul.bf16.gmra.mxu3 %v2375_v34  ;;  %v1744_v34 = vld [vmem:[#allocation8 + $0x40] sm:$0xff] }
 0x134   : > { %1109 = vmatpush.bf16.msrb.mxu1 %v1744_v34 }
 0x136   : > { %v666_v21 = vpop.f32.mrf.mxu3  ;;  %v764_v53 = vpop.f32.mrf.mxu2 }
 0x137   : > { %v667_v59 = vadd.f32 %v666_v21, %v2426_v44  ;;  %v765_v31 = vadd.f32 %v764_v53, %v2484_v36 }
 0x139   : > { %v2462_v62 = vadd.f32 %v724_v22, %v667_v59 }
 0x13a   : > { %v2464_v20 = vpop.f32.mrf.mxu1 }
 0x13b   : > { %v882_v21 = vmax.f32 %v2462_v62, 0.0 }
 0x13e   : > { %v668_v37 = vpop.f32.mrf.mxu3  ;;  %v767_v54 = vpop.f32.mrf.mxu2 }
 0x13f   : > { %1067 = vmatmul.bf16.gmra.mxu0 %v898_v3  ;;  %v669_v48 = vadd.f32 %v668_v37, %v2426_v44 }
 0x141   : > { %v727_v50 = vadd.f32 %v2464_v20, %v669_v48 }
 0x142   : > { %v729_v32 = vpop.f32.mrf.mxu1 }
 0x143   : > { %834 = vmatmul.bf16.gmra.mxu3 %v2386_v46  ;;  %v717_v46 = vadd.f32 %v716_v5, %v659_v15  ;;  %v884_v29 = vmax.f32 %v727_v50, 0.0 }
 0x145   : > { %v876_v19 = vmax.f32 %v717_v46, 0.0  ;;  %v906_v2 = vpack.c.bf16 %v884_v29, %v882_v21 }
 0x146   : > { %v671_v4 = vpop.f32.mrf.mxu3  ;;  %v769_v0 = vpop.f32.mrf.mxu2 }
 0x147   : > { %v672_v33 = vadd.f32 %v671_v4, %v2426_v44  ;;  %v902_v26 = vpack.c.bf16 %v876_v19, %v874_v25 }
 0x149   : > { %v2470_v11 = vadd.f32 %v729_v32, %v672_v33  ;;  %v1757_v32 = vld [vmem:[#allocation10 + $0x28] sm:$0xff] }
 0x14a   : > { %v2472_v12 = vpop.f32.mrf.mxu1 }
 0x14b   : > { %v886_v63 = vmax.f32 %v2470_v11, 0.0 }
 0x14e   : > { %v673_v14 = vpop.f32.mrf.mxu3  ;;  %v772_v46 = vpop.f32.mrf.mxu2 }
 0x14f   : > { %1072 = vmatmul.bf16.gmra.mxu0 %v900_v13 }
 0x152   : > { %v734_v17 = vpop.f32.mrf.mxu1 }
 0x153   : > { %839 = vmatmul.bf16.gmra.mxu3 %v2396_v6  ;;  %v722_v6 = vadd.f32 %v721_v51, %v664_v28  ;;  %v1758_v51 = vld [vmem:[#allocation10 + $0x30] sm:$0xff] }
 0x154   : > { %1258 = vmatpush.bf16.msrb.mxu2 %v1758_v51 }
 0x155   : > { %v880_v39 = vmax.f32 %v722_v6, 0.0 }
 0x156   : > { %v676_v45 = vpop.f32.mrf.mxu3  ;;  %v774_v11 = vpop.f32.mrf.mxu2 }
 0x157   : > { %v677_v18 = vadd.f32 %v676_v45, %v2426_v44  ;;  %v904_v42 = vpack.c.bf16 %v880_v39, %v878_v41 }
 0x158   : > { %1259 = vmatpush.bf16.msrb.mxu2 %v1757_v32 }
 0x159   : > { %v2478_v61 = vadd.f32 %v734_v17, %v677_v18 }
 0x15a   : > { %v736_v24 = vpop.f32.mrf.mxu1 }
 0x15b   : > { %v1756_v24 = vld [vmem:[#allocation10 + $0x20] sm:$0xff]  ;;  %v890_v16 = vmax.f32 %v2478_v61, 0.0 }
 0x15c   : > { %1260 = vmatpush.bf16.msrb.mxu2 %v1756_v24 }
 0x15d   : > { %v910_v28 = vpack.c.bf16 %v890_v16, %v890_v16 }
 0x15e   : > { %v678_v27 = vpop.f32.mrf.mxu3 }
 0x15f   : > { %1077 = vmatmul.bf16.gmra.mxu0 %v902_v26  ;;  %v763_v26 = vadd.f32 %v762_v40, %v2484_v36  ;;  %v768_v40 = vadd.f32 %v767_v54, %v2484_v36  ;;  %v775_v54 = vadd.f32 %v774_v11, %v2484_v36 }
 0x163   : > { %844 = vmatmul.bf16.gmra.mxu3 %v2408_v30  ;;  %v752_v30 = vpop.f32.mrf.mxu0 }
 0x164   : > { %v753_v22 = vadd.f32 %v752_v30, %v2484_v36 }
 0x166   : > { %v805_v5 = vpop.f32.mrf.mxu3 }
 0x167   : > { %v806_v9 = vadd.f32 %v805_v5, %v748_v58  ;;  %v777_v58 = vpop.f32.mrf.mxu2 }
 0x169   : > { %v855_v8 = vmax.f32 %v806_v9, 0.0 }
 0x16b   : > { %v754_v52 = vpop.f32.mrf.mxu0 }
 0x16c   : > { %v755_v59 = vadd.f32 %v754_v52, %v2484_v36 }
 0x16e   : > { %v807_v43 = vpop.f32.mrf.mxu3 }
 0x16f   : > { %v808_v47 = vadd.f32 %v807_v43, %v750_v10  ;;  %1082 = vmatmul.bf16.gmra.mxu0 %v904_v42  ;;  %v1755_v10 = vld [vmem:[#allocation10 + $0x18] sm:$0xff]  ;;  %v779_v43 = vpop.f32.mrf.mxu2 }
 0x170   : > { %1261 = vmatpush.bf16.msrb.mxu2 %v1755_v10 }
 0x171   : > { %v857_v49 = vmax.f32 %v808_v47, 0.0  ;;  %v770_v47 = vadd.f32 %v769_v0, %v2484_v36 }
 0x173   : > { %v893_v55 = vpack.c.bf16 %v857_v49, %v855_v8  ;;  %849 = vmatmul.bf16.gmra.mxu3 %v2418_v38  ;;  %v674_v38 = vadd.f32 %v673_v14, %v2426_v44  ;;  %v760_v44 = vadd.f32 %v759_v35, %v2484_v36 }
 0x175   : > { %1110 = vmatmul.bf16.vlgmr.msrb.gmra.mxu1 %v893_v55  ;;  %v732_v4 = vadd.f32 %v2472_v12, %v674_v38  ;;  %v1754_v55 = vld [vmem:[#allocation10 + $0x10] sm:$0xff] }
 0x176   : > { %v810_v56 = vpop.f32.mrf.mxu3  ;;  %1262 = vmatpush.bf16.msrb.mxu2 %v1754_v55 }
 0x177   : > { %v811_v60 = vadd.f32 %v810_v56, %v753_v22  ;;  %v888_v62 = vmax.f32 %v732_v4, 0.0  ;;  %v782_v29 = vpop.f32.mrf.mxu2  ;;  %v773_v22 = vadd.f32 %v772_v46, %v2484_v36 }
 0x179   : > { %v859_v1 = vmax.f32 %v811_v60, 0.0  ;;  %v908_v15 = vpack.c.bf16 %v888_v62, %v886_v63 }
 0x17e   : > { %v812_v3 = vpop.f32.mrf.mxu3 }
 0x17f   : > { %v813_v37 = vadd.f32 %v812_v3, %v755_v59  ;;  %1087 = vmatmul.bf16.gmra.mxu0 %v906_v2  ;;  %v784_v2 = vpop.f32.mrf.mxu2 }
 0x181   : > { %v861_v20 = vmax.f32 %v813_v37, 0.0 }
 0x183   : > { %v895_v34 = vpack.c.bf16 %v861_v20, %v859_v1  ;;  %v1753_v1 = vld [vmem:[#allocation10 + $0x8] sm:$0xff] }
 0x184   : > { %1263 = vmatpush.bf16.msrb.mxu2 %v1753_v1 }
 0x185   : > { %1115 = vmatmul.bf16.gmra.mxu1 %v895_v34  ;;  %v778_v34 = vadd.f32 %v777_v58, %v2484_v36 }
 0x186   : > { %v815_v33 = vpop.f32.mrf.mxu3 }
 0x187   : > { %v816_v14 = vadd.f32 %v815_v33, %v758_v7  ;;  %v787_v0 = vpop.f32.mrf.mxu2  ;;  %v780_v33 = vadd.f32 %v779_v43, %v2484_v36 }
 0x189   : > { %v863_v18 = vmax.f32 %v816_v14, 0.0 }
 0x18c   : > { %v2499_v13 = vpop.f32.mrf.mxu0 }
 0x18e   : > { %v817_v17 = vpop.f32.mrf.mxu3 }
 0x18f   : > { %v818_v45 = vadd.f32 %v817_v17, %v760_v44  ;;  %1092 = vmatmul.bf16.gmra.mxu0 %v908_v15  ;;  %v1752_v17 = vld [vmem:[#allocation10] sm:$0xff] }
 0x190   : > { %1264 = vmatpush.bf16.msrb.mxu2 %v1752_v17 }
 0x191   : > { %v865_v19 = vmax.f32 %v818_v45, 0.0  ;;  %v789_v45 = vpop.f32.mrf.mxu2 }
 0x193   : > { %v897_v12 = vpack.c.bf16 %v865_v19, %v863_v18  ;;  %v783_v19 = vadd.f32 %v782_v29, %v2484_v36 }
 0x194   : > { %v2502_v25 = vpop.f32.mrf.mxu0 }
 0x195   : > { %1120 = vmatmul.bf16.gmra.mxu1 %v897_v12 }
 0x196   : > { %v820_v23 = vpop.f32.mrf.mxu3 }
 0x197   : > { %v821_v35 = vadd.f32 %v820_v23, %v763_v26  ;;  %v785_v23 = vadd.f32 %v784_v2, %v2484_v36 }
 0x199   : > { %v867_v5 = vmax.f32 %v821_v35, 0.0  ;;  %v792_v24 = vpop.f32.mrf.mxu2 }
 0x19c   : > { %v2506_v27 = vpop.f32.mrf.mxu0 }
 0x19e   : > { %v822_v6 = vpop.f32.mrf.mxu3 }
 0x19f   : > { %v823_v57 = vadd.f32 %v822_v6, %v765_v31  ;;  %1097 = vmatmul.bf16.gmra.mxu0 %v910_v28 }
 0x1a1   : > { %v869_v39 = vmax.f32 %v823_v57, 0.0  ;;  %v794_v57 = vpop.f32.mrf.mxu2 }
 0x1a3   : > { %v899_v41 = vpack.c.bf16 %v869_v39, %v867_v5  ;;  %v788_v39 = vadd.f32 %v787_v0, %v2484_v36 }
 0x1a4   : > { %v2509_v9 = vpop.f32.mrf.mxu0 }
 0x1a5   : > { %1125 = vmatmul.bf16.gmra.mxu1 %v899_v41  ;;  %v790_v41 = vadd.f32 %v789_v45, %v2484_v36 }
 0x1a6   : > { %v825_v61 = vpop.f32.mrf.mxu3 }
 0x1a7   : > { %v826_v30 = vadd.f32 %v825_v61, %v768_v40 }
 0x1a9   : > { %v871_v49 = vmax.f32 %v826_v30, 0.0 }
 0x1ac   : > { %v2512_v42 = vpop.f32.mrf.mxu0 }
 0x1ae   : > { %v827_v48 = vpop.f32.mrf.mxu3 }
 0x1af   : > { %v828_v8 = vadd.f32 %v827_v48, %v770_v47  ;;  %v2542_v48 = vld [vmem:[%s2679_s4] ss:$0 sm:$0xff] }
 0x1b0   : > { %v1054_v55 = vadd.f32 %v2542_v48, %v2499_v13  ;;  %v1059_v13 = vadd.f32 %v2542_v48, %v2506_v27  ;;  %v1064_v17 = vadd.f32 %v2542_v48, %v2512_v42 }
 0x1b1   : > { %v873_v51 = vmax.f32 %v828_v8, 0.0 }
 0x1b3   : > { %v901_v53 = vpack.c.bf16 %v873_v51, %v871_v49  ;;  %v793_v51 = vadd.f32 %v792_v24, %v2484_v36 }
 0x1b4   : > { %v2515_v50 = vpop.f32.mrf.mxu0 }
 0x1b5   : > { %1130 = vmatmul.bf16.gmra.mxu1 %v901_v53  ;;  %v1066_v27 = vadd.f32 %v2542_v48, %v2515_v50 }
 0x1b6   : > { %v830_v56 = vpop.f32.mrf.mxu3 }
 0x1b7   : > { %v831_v21 = vadd.f32 %v830_v56, %v773_v22  ;;  %v1056_v56 = vadd.f32 %v2542_v48, %v2502_v25  ;;  %v1061_v25 = vadd.f32 %v2542_v48, %v2509_v9 }
 0x1b9   : > { %v875_v3 = vmax.f32 %v831_v21, 0.0 }
 0x1bc   : > { %v2518_v52 = vpop.f32.mrf.mxu0 }
 0x1be   : > { %v832_v59 = vpop.f32.mrf.mxu3 }
 0x1bf   : > { %v833_v60 = vadd.f32 %v832_v59, %v775_v54 }
 0x1c1   : > { %v877_v37 = vmax.f32 %v833_v60, 0.0 }
 0x1c3   : > { %v903_v38 = vpack.c.bf16 %v877_v37, %v875_v3 }
 0x1c4   : > { %v2521_v20 = vpop.f32.mrf.mxu0 }
 0x1c5   : > { %1135 = vmatmul.bf16.gmra.mxu1 %v903_v38  ;;  %v1071_v42 = vadd.f32 %v2542_v48, %v2521_v20 }
 0x1c6   : > { %v835_v32 = vpop.f32.mrf.mxu3 }
 0x1c7   : > { %v836_v62 = vadd.f32 %v835_v32, %v778_v34 }
 0x1c9   : > { %v879_v15 = vmax.f32 %v836_v62, 0.0 }
 0x1cc   : > { %v2524_v4 = vpop.f32.mrf.mxu0 }
 0x1ce   : > { %v837_v7 = vpop.f32.mrf.mxu3 }
 0x1cf   : > { %v838_v63 = vadd.f32 %v837_v7, %v780_v33 }
 0x1d1   : > { %v881_v44 = vmax.f32 %v838_v63, 0.0 }
 0x1d3   : > { %v905_v14 = vpack.c.bf16 %v881_v44, %v879_v15 }
 0x1d4   : > { %v2527_v46 = vpop.f32.mrf.mxu0 }
 0x1d5   : > { %1140 = vmatmul.bf16.gmra.mxu1 %v905_v14 }
 0x1d6   : > { %v840_v18 = vpop.f32.mrf.mxu3 }
 0x1d7   : > { %v841_v11 = vadd.f32 %v840_v18, %v783_v19 }
 0x1d9   : > { %v883_v28 = vmax.f32 %v841_v11, 0.0 }
 0x1dc   : > { %v2530_v12 = vpop.f32.mrf.mxu0 }
 0x1de   : > { %v842_v16 = vpop.f32.mrf.mxu3 }
 0x1df   : > { %v843_v26 = vadd.f32 %v842_v16, %v785_v23 }
 0x1e1   : > { %v885_v31 = vmax.f32 %v843_v26, 0.0 }
 0x1e3   : > { %v907_v35 = vpack.c.bf16 %v885_v31, %v883_v28  ;;  %v1069_v28 = vadd.f32 %v2542_v48, %v2518_v52 }
 0x1e4   : > { %v2533_v6 = vpop.f32.mrf.mxu0 }
 0x1e5   : > { %1145 = vmatmul.bf16.gmra.mxu1 %v907_v35 }
 0x1e6   : > { %v845_v5 = vpop.f32.mrf.mxu3 }
 0x1e7   : > { %v846_v10 = vadd.f32 %v845_v5, %v788_v39 }
 0x1e9   : > { %v887_v43 = vmax.f32 %v846_v10, 0.0  ;;  %v1074_v10 = vadd.f32 %v2542_v48, %v2524_v4 }
 0x1ec   : > { %v2536_v58 = vpop.f32.mrf.mxu0 }
 0x1ee   : > { %v847_v61 = vpop.f32.mrf.mxu3 }
 0x1ef   : > { %v848_v40 = vadd.f32 %v847_v61, %v790_v41  ;;  %v1076_v61 = vadd.f32 %v2542_v48, %v2527_v46 }
 0x1f1   : > { %v889_v47 = vmax.f32 %v848_v40, 0.0 }
 0x1f2   : > { %v1111_v30 = vpop.f32.mrf.mxu1 }
 0x1f3   : > { %v909_v8 = vpack.c.bf16 %v889_v47, %v887_v43  ;;  %v1112_v29 = vadd.f32 %v1111_v30, %v1054_v55 }
 0x1f4   : > { %v2544_v49 = vpop.f32.mrf.mxu0 }
 0x1f5   : > { %1150 = vmatmul.bf16.gmra.mxu1 %v909_v8  ;;  %v1160_v60 = vmax.f32 %v1112_v29, 0.0 }
 0x1f6   : > { %v850_v53 = vpop.f32.mrf.mxu3 }
 0x1f7   : > { %v851_v22 = vadd.f32 %v850_v53, %v793_v51  ;;  %v1079_v51 = vadd.f32 %v2542_v48, %v2530_v12  ;;  %v1081_v53 = vadd.f32 %v2542_v48, %v2533_v6 }
 0x1f9   : > { %v891_v3 = vmax.f32 %v851_v22, 0.0 }
 0x1fa   : > { %v1113_v54 = vpop.f32.mrf.mxu1 }
 0x1fb   : > { %v1114_v21 = vadd.f32 %v1113_v54, %v1056_v56  ;;  %v911_v1 = vpack.c.bf16 %v891_v3, %v891_v3 }
 0x1fc   : > { %v2551_v59 = vpop.f32.mrf.mxu0 }
 0x1fd   : > { %v1161_v2 = vmax.f32 %v1114_v21, 0.0  ;;  %v1084_v21 = vadd.f32 %v2542_v48, %v2536_v58 }
 0x1fe   : > { %v852_v37 = vpop.f32.mrf.mxu3 }
 0x1ff   : > { %v1179_v38 = vpack.c.bf16 %v1161_v2, %v1160_v60  ;;  %v1086_v60 = vadd.f32 %v2542_v48, %v2544_v49 }
 0x201   : > { %1265 = vmatmul.bf16.vlgmr.msrb.gmra.mxu2 %v1179_v38 }
 0x202   : > { %v1116_v36 = vpop.f32.mrf.mxu1 }
 0x203   : > { %v1117_v34 = vadd.f32 %v1116_v36, %v1059_v13  ;;  %v1089_v36 = vadd.f32 %v2542_v48, %v2551_v59 }
 0x204   : > { %v2553_v32 = vpop.f32.mrf.mxu0 }
 0x205   : > { %1155 = vmatmul.bf16.gmra.mxu1 %v911_v1  ;;  %v1162_v7 = vmax.f32 %v1117_v34, 0.0  ;;  %v1091_v13 = vadd.f32 %v2542_v48, %v2553_v32 }
 0x20a   : > { %v1118_v0 = vpop.f32.mrf.mxu1 }
 0x20b   : > { %v1119_v33 = vadd.f32 %v1118_v0, %v1061_v25 }
 0x20c   : > { %v2559_v62 = vpop.f32.mrf.mxu0 }
 0x20d   : > { %v1163_v63 = vmax.f32 %v1119_v33, 0.0 }
 0x20f   : > { %v1180_v15 = vpack.c.bf16 %v1163_v63, %v1162_v7  ;;  %v1094_v63 = vadd.f32 %v2542_v48, %v2559_v62 }
 0x211   : > { %1270 = vmatmul.bf16.gmra.mxu2 %v1180_v15 }
 0x212   : > { %v1121_v44 = vpop.f32.mrf.mxu1 }
 0x213   : > { %v1122_v45 = vadd.f32 %v1121_v44, %v1064_v17 }
 0x214   : > { %v2561_v14 = vpop.f32.mrf.mxu0 }
 0x215   : > { %v1164_v24 = vmax.f32 %v1122_v45, 0.0  ;;  %v1096_v15 = vadd.f32 %v2542_v48, %v2561_v14 }
 0x21a   : > { %v1123_v9 = vpop.f32.mrf.mxu1 }
 0x21b   : > { %v1124_v18 = vadd.f32 %v1123_v9, %v1066_v27  ;;  %v2597_v9 = vld [vmem:[%s2681_s6] ss:$0 sm:$0xff] }
 0x21c   : > { %v2567_v19 = vpop.f32.mrf.mxu0 }
 0x21d   : > { %v1165_v23 = vmax.f32 %v1124_v18, 0.0  ;;  %v1099_v62 = vadd.f32 %v2542_v48, %v2567_v19 }
 0x21f   : > { %v1181_v11 = vpack.c.bf16 %v1165_v23, %v1164_v24 }
 0x221   : > { %1275 = vmatmul.bf16.gmra.mxu2 %v1181_v11 }
 0x222   : > { %v1126_v16 = vpop.f32.mrf.mxu1 }
 0x223   : > { %v1127_v31 = vadd.f32 %v1126_v16, %v1069_v28 }
 0x224   : > { %v1100_v26 = vpop.f32.mrf.mxu0 }
 0x225   : > { %v1166_v57 = vmax.f32 %v1127_v31, 0.0 }
 0x22a   : > { %v1128_v35 = vpop.f32.mrf.mxu1 }
 0x22b   : > { %v1129_v50 = vadd.f32 %v1128_v35, %v1071_v42 }
 0x22d   : > { %v1167_v5 = vmax.f32 %v1129_v50, 0.0 }
 0x22f   : > { %v1182_v39 = vpack.c.bf16 %v1167_v5, %v1166_v57 }
 0x231   : > { %1280 = vmatmul.bf16.gmra.mxu2 %v1182_v39 }
 0x232   : > { %v1131_v41 = vpop.f32.mrf.mxu1 }
 0x233   : > { %v1132_v40 = vadd.f32 %v1131_v41, %v1074_v10 }
 0x235   : > { %v1168_v47 = vmax.f32 %v1132_v40, 0.0 }
 0x23a   : > { %v1133_v43 = vpop.f32.mrf.mxu1 }
 0x23b   : > { %v1134_v52 = vadd.f32 %v1133_v43, %v1076_v61 }
 0x23d   : > { %v1169_v30 = vmax.f32 %v1134_v52, 0.0 }
 0x23f   : > { %v1183_v20 = vpack.c.bf16 %v1169_v30, %v1168_v47 }
 0x241   : > { %1285 = vmatmul.bf16.gmra.mxu2 %v1183_v20 }
 0x242   : > { %v1136_v8 = vpop.f32.mrf.mxu1 }
 0x243   : > { %v1137_v55 = vadd.f32 %v1136_v8, %v1079_v51 }
 0x245   : > { %v1170_v29 = vmax.f32 %v1137_v55, 0.0 }
 0x24a   : > { %v1138_v56 = vpop.f32.mrf.mxu1 }
 0x24b   : > { %v1139_v4 = vadd.f32 %v1138_v56, %v1081_v53 }
 0x24d   : > { %v1171_v22 = vmax.f32 %v1139_v4, 0.0 }
 0x24f   : > { %v1184_v46 = vpack.c.bf16 %v1171_v22, %v1170_v29 }
 0x251   : > { %1290 = vmatmul.bf16.gmra.mxu2 %v1184_v46 }
 0x252   : > { %v1141_v54 = vpop.f32.mrf.mxu1 }
 0x253   : > { %v1142_v2 = vadd.f32 %v1141_v54, %v1084_v21 }
 0x255   : > { %v1172_v37 = vmax.f32 %v1142_v2, 0.0 }
 0x25a   : > { %v1143_v3 = vpop.f32.mrf.mxu1 }
 0x25b   : > { %v1144_v12 = vadd.f32 %v1143_v3, %v1086_v60 }
 0x25d   : > { %v1173_v38 = vmax.f32 %v1144_v12, 0.0 }
 0x25f   : > { %v1185_v6 = vpack.c.bf16 %v1173_v38, %v1172_v37 }
 0x261   : > { %1295 = vmatmul.bf16.gmra.mxu2 %v1185_v6 }
 0x262   : > { %v1146_v1 = vpop.f32.mrf.mxu1 }
 0x263   : > { %v1147_v25 = vadd.f32 %v1146_v1, %v1089_v36 }
 0x265   : > { %v1174_v0 = vmax.f32 %v1147_v25, 0.0 }
 0x26a   : > { %v1148_v58 = vpop.f32.mrf.mxu1 }
 0x26b   : > { %v1149_v34 = vadd.f32 %v1148_v58, %v1091_v13 }
 0x26d   : > { %v1175_v49 = vmax.f32 %v1149_v34, 0.0 }
 0x26f   : > { %v1186_v33 = vpack.c.bf16 %v1175_v49, %v1174_v0 }
 0x271   : > { %1300 = vmatmul.bf16.gmra.mxu2 %v1186_v33 }
 0x272   : > { %v1151_v7 = vpop.f32.mrf.mxu1 }
 0x273   : > { %v1152_v44 = vadd.f32 %v1151_v7, %v1094_v63 }
 0x275   : > { %v1176_v27 = vmax.f32 %v1152_v44, 0.0 }
 0x27a   : > { %v1153_v59 = vpop.f32.mrf.mxu1 }
 0x27b   : > { %v1154_v17 = vadd.f32 %v1153_v59, %v1096_v15 }
 0x27d   : > { %v1177_v32 = vmax.f32 %v1154_v17, 0.0 }
 0x27f   : > { %v1187_v45 = vpack.c.bf16 %v1177_v32, %v1176_v27 }
 0x281   : > { %1305 = vmatmul.bf16.gmra.mxu2 %v1187_v45 }
 0x282   : > { %v1156_v18 = vpop.f32.mrf.mxu1 }
 0x283   : > { %v1157_v23 = vadd.f32 %v1156_v18, %v1099_v62 }
 0x284   : > { %v1266_v24 = vpop.f32.mrf.mxu2 }
 0x285   : > { %v1267_v14 = vadd.f32 %v2597_v9, %v1266_v24  ;;  %v1178_v16 = vmax.f32 %v1157_v23, 0.0 }
 0x287   : > { %1315 = vst [vmem:[%s2602_s20] sm:$0xff] %v1267_v14  ;;  %v1188_v42 = vpack.c.bf16 %v1178_v16, %v1178_v16 }
 0x28a   : > { %v1158_v11 = vpop.f32.mrf.mxu1 }
 0x28c   : > { %v1268_v26 = vpop.f32.mrf.mxu2 }
 0x28d   : > { %v1269_v28 = vadd.f32 %v2597_v9, %v1268_v26 }
 0x28f   : > { %1316 = vst [vmem:[%s2602_s20 + $0x8] sm:$0xff] %v1269_v28 }
 0x291   : > { %1310 = vmatmul.bf16.gmra.mxu2 %v1188_v42 }
 0x294   : > { %v1271_v48 = vpop.f32.mrf.mxu2 }
 0x295   : > { %v1272_v19 = vadd.f32 %v2597_v9, %v1271_v48 }
 0x297   : > { %1317 = vst [vmem:[%s2602_s20 + $0x10] sm:$0xff] %v1272_v19 }
 0x29c   : > { %v1273_v31 = vpop.f32.mrf.mxu2 }
 0x29d   : > { %v1274_v35 = vadd.f32 %v2597_v9, %v1273_v31 }
 0x29f   : > { %1318 = vst [vmem:[%s2602_s20 + $0x18] sm:$0xff] %v1274_v35 }
 0x2a4   : > { %v1276_v50 = vpop.f32.mrf.mxu2 }
 0x2a5   : > { %v1277_v57 = vadd.f32 %v2597_v9, %v1276_v50 }
 0x2a7   : > { %1319 = vst [vmem:[%s2602_s20 + $0x20] sm:$0xff] %v1277_v57 }
 0x2ac   : > { %v1278_v5 = vpop.f32.mrf.mxu2 }
 0x2ad   : > { %v1279_v39 = vadd.f32 %v2597_v9, %v1278_v5 }
 0x2af   : > { %1320 = vst [vmem:[%s2602_s20 + $0x28] sm:$0xff] %v1279_v39 }
 0x2b4   : > { %v1281_v41 = vpop.f32.mrf.mxu2 }
 0x2b5   : > { %v1282_v10 = vadd.f32 %v2597_v9, %v1281_v41 }
 0x2b7   : > { %1321 = vst [vmem:[%s2602_s20 + $0x30] sm:$0xff] %v1282_v10 }
 0x2bc   : > { %v1283_v61 = vpop.f32.mrf.mxu2 }
 0x2bd   : > { %v1284_v40 = vadd.f32 %v2597_v9, %v1283_v61 }
 0x2bf   : > { %1322 = vst [vmem:[%s2602_s20 + $0x38] sm:$0xff] %v1284_v40 }
 0x2c4   : > { %v1286_v43 = vpop.f32.mrf.mxu2 }
 0x2c5   : > { %v1287_v52 = vadd.f32 %v2597_v9, %v1286_v43 }
 0x2c7   : > { %1323 = vst [vmem:[%s2602_s20 + $0x40] sm:$0xff] %v1287_v52 }
 0x2cc   : > { %v1288_v47 = vpop.f32.mrf.mxu2 }
 0x2cd   : > { %v1289_v30 = vadd.f32 %v2597_v9, %v1288_v47 }
 0x2cf   : > { %1324 = vst [vmem:[%s2602_s20 + $0x48] sm:$0xff] %v1289_v30 }
 0x2d4   : > { %v1291_v20 = vpop.f32.mrf.mxu2 }
 0x2d5   : > { %v1292_v8 = vadd.f32 %v2597_v9, %v1291_v20 }
 0x2d7   : > { %1325 = vst [vmem:[%s2602_s20 + $0x50] sm:$0xff] %v1292_v8 }
 0x2dc   : > { %v1293_v51 = vpop.f32.mrf.mxu2 }
 0x2dd   : > { %v1294_v53 = vadd.f32 %v2597_v9, %v1293_v51 }
 0x2df   : > { %1326 = vst [vmem:[%s2602_s20 + $0x58] sm:$0xff] %v1294_v53 }
 0x2e4   : > { %v1296_v55 = vpop.f32.mrf.mxu2 }
 0x2e5   : > { %v1297_v56 = vadd.f32 %v2597_v9, %v1296_v55 }
 0x2e7   : > { %1327 = vst [vmem:[%s2602_s20 + $0x60] sm:$0xff] %v1297_v56 }
 0x2ec   : > { %v1298_v4 = vpop.f32.mrf.mxu2 }
 0x2ed   : > { %v1299_v29 = vadd.f32 %v2597_v9, %v1298_v4 }
 0x2ef   : > { %1328 = vst [vmem:[%s2602_s20 + $0x68] sm:$0xff] %v1299_v29 }
 0x2f4   : > { %v1301_v22 = vpop.f32.mrf.mxu2 }
 0x2f5   : > { %v1302_v46 = vadd.f32 %v2597_v9, %v1301_v22 }
 0x2f7   : > { %1329 = vst [vmem:[%s2602_s20 + $0x70] sm:$0xff] %v1302_v46 }
 0x2fc   : > { %v1303_v54 = vpop.f32.mrf.mxu2 }
 0x2fd   : > { %v1304_v21 = vadd.f32 %v2597_v9, %v1303_v54 }
 0x2ff   : > { %1330 = vst [vmem:[%s2602_s20 + $0x78] sm:$0xff] %v1304_v21 }
 0x304   : > { %v1306_v60 = vpop.f32.mrf.mxu2 }
 0x305   : > { %v1307_v2 = vadd.f32 %v2597_v9, %v1306_v60 }
 0x307   : > { %1331 = vst [vmem:[%s2602_s20 + $0x80] sm:$0xff] %v1307_v2 }
 0x30c   : > { %v1308_v3 = vpop.f32.mrf.mxu2 }
 0x30d   : > { %v1309_v12 = vadd.f32 %v2597_v9, %v1308_v3 }
 0x30f   : > { %1332 = vst [vmem:[%s2602_s20 + $0x88] sm:$0xff] %v1309_v12 }
 0x314   : > { %v1311_v37 = vpop.f32.mrf.mxu2 }
 0x315   : > { %v1312_v38 = vadd.f32 %v2597_v9, %v1311_v37 }
 0x317   : > { %1333 = vst [vmem:[%s2602_s20 + $0x90] sm:$0xff] %v1312_v38 }
 0x318   : > { %2063 = shalt.err (!%p2060_p10)
}
 0x319   : > { %s2122_s2 = smov 128   ;;  %s2123_s19 = smov 8  }
 0x31a   : > { %1807 = dma.vmem_to_hbm [thread:$0]  (%p2248_p3), %s1348_s23, 2432, %s1350_s11, %s1335_s15, %s2122_s2, %s2122_s2, %s2123_s19  }
 0x31c   : > { %v1313_v6 = vpop.f32.mrf.mxu2 }
 0x31d PF: > { %s1364_s18 = sand.u32 1, %s2098_s24   ;;  %p2695_p12 = scmp.ge.s32.totalorder %s2110_s27, 2 }
 0x31e   : > { %s1365_s20 = scalar_lea.sflag [#allocation4], %s1364_s18 }
 0x31f   : > { %p1827_p13 = pnand %p2695_p12, %p2199_p6 }
 0x321   : > { %p1828_p0 = pneg %p1827_p13 }
 0x323   : > { %2093 = dma.done.wait (%p1828_p0), %s1365_s20, 2432  }
 0x324   : > { %2095 = vsyncadd (%p1828_p0), %s1365_s20, 4294964864  ;;  %p22_p5 = scmp.ge.s32.totalorder %s2238_s21, 4   ;;  %s2696_s24 = smov %s2102_s25 }
 0x325   : > { %s2697_s25 = smov %s2106_s26  ;;  %s2698_s26 = smov %s2254_s13 }
 0x326   : > { %s2699_s27 = smov %s2238_s21  ;;  %24 = sbr.rel (!%p22_p5) target bundleno = 11 (0xb), region = 109 }
 0x32b   :  { %1371 = vsyncpa [#allocation3], 1 }
 0x32c   :  { %1373 = vsyncpa [#allocation3 + $0x1], 1 }
 0x32d   :  { %1374 = vsyncpa [#allocation6], 1 }
 0x32e   :  { %1375 = vsyncpa [#allocation9], 1 }
 0x32f   :  { %1376 = vsyncpa [#allocation4], 1 }
 0x330   :  { %1378 = vsyncpa [#allocation4 + $0x1], 1 }

</bundles_post_ra>
